<compile_context>
chip_gen: v6e
topology: v6e:2x2x1
jax: 0.10.0
libtpu: 0.0.40
codegen_flags: <defaults>
</compile_context>

<pallas_src>
import functools

import jax
import jax.numpy as jnp
from jax import lax
from jax.experimental import pallas as pl
from jax.experimental.pallas import tpu as pltpu

VERY_NEGATIVE_NUMBER = -1e30

_LANE = 128   # vreg lane width
_SUBLANE = 8  # vreg sublane width


def _lstm_fwd_kernel(x_ref, lens_ref, wih_ref, whh_ref, b_ref, wout_ref,
                     bout_ref, o_ref, pre_sc, h_sc, c_sc, mx_sc):
    """One (batch-tile, time-chunk) grid step.

    Grid: (num_batch_tiles [parallel], num_time_chunks [arbitrary]).

    x_ref:    (Tc, Bt, E)    embedded input chunk (compute dtype)
    lens_ref: (Bt, 1)        int32 sequence lengths (padded rows = 0)
    wih_ref:  (E, 4*Hg)      W_ih^T, gate-packed/padded (compute dtype)
    whh_ref:  (Hg, 4*Hg)     W_hh^T, rows + gate columns padded
    b_ref:    (1, 4*Hg)      b_ih + b_hh (float32)
    wout_ref: (Hg, Cp)       W_out^T, rows/cols zero-padded
    bout_ref: (1, Cp)        float32
    o_ref:    (Bt, Cp)       float32 logits (written on the last time chunk)
    pre_sc:   (Tc*Bt, 4*Hg)  f32 scratch: chunk input projection
    h_sc/c_sc/mx_sc: (Bt, Hg) f32 recurrence carry across time chunks
    """
    ti = pl.program_id(1)
    nt = pl.num_programs(1)
    tc, bt, e = x_ref.shape
    hg = whh_ref.shape[0]

    @pl.when(ti == 0)
    def _init():
        h_sc[...] = jnp.zeros_like(h_sc)
        c_sc[...] = jnp.zeros_like(c_sc)
        mx_sc[...] = jnp.full_like(mx_sc, VERY_NEGATIVE_NUMBER)

    # ---- Phase 1: hoisted input projection for this time chunk: one MXU
    # matmul over all Tc*Bt rows (kept f32: it is a small, chunk-sized
    # scratch now, so halving it to bf16 is not worth the precision loss). ---
    x2d = x_ref[...].reshape(tc * bt, e)
    pre_sc[...] = (
        jnp.dot(x2d, wih_ref[...], preferred_element_type=jnp.float32)
        + b_ref[...])

    whh = whh_ref[...]
    lens = lens_ref[...]                       # (Bt, 1) int32
    t0 = ti * tc                               # global time offset of chunk

    packed = hg < _LANE                        # 4 gates share one 128-lane blk
    if packed:
        # Hoisted out of the serial loop (JAX does not CSE broadcast_in_dim).
        lane = lax.broadcasted_iota(jnp.int32, (bt, 4 * hg), 1)
        g_lane = jnp.logical_and(lane >= 2 * hg, lane < 3 * hg)

    # ---- Phase 2: serial recurrence over this chunk (batch-parallel VPU) ---
    def step(t, carry):
        h, c, mx = carry                       # f32 (Bt, Hg)
        row = pl.multiple_of(t * bt, _SUBLANE)
        gates = pre_sc[pl.ds(row, bt), :] + jnp.dot(
            h.astype(whh.dtype), whh, preferred_element_type=jnp.float32)
        # PyTorch LSTM gate order: i, f, g, o.
        if packed:
            # Fused activation pass: sigmoid everywhere, tanh on the g lanes.
            acts = jnp.where(g_lane, jnp.tanh(gates), jax.nn.sigmoid(gates))
            i_g = acts[:, 0 * hg:1 * hg]
            f_g = acts[:, 1 * hg:2 * hg]
            g_g = acts[:, 2 * hg:3 * hg]
            o_g = acts[:, 3 * hg:4 * hg]
        else:
            # Hg is a multiple of 128: every slice is a lane-aligned block.
            i_g = jax.nn.sigmoid(gates[:, 0 * hg:1 * hg])
            f_g = jax.nn.sigmoid(gates[:, 1 * hg:2 * hg])
            g_g = jnp.tanh(gates[:, 2 * hg:3 * hg])
            o_g = jax.nn.sigmoid(gates[:, 3 * hg:4 * hg])
        c = f_g * c + i_g * g_g
        h = o_g * jnp.tanh(c)
        # Length mask built in-kernel (compare + select).  Select-to--1e30 vs
        # the reference's additive -1e30 is identical for every row with
        # length >= 1; zero-length rows are padding and are discarded.
        valid = lens > (t0 + t)
        mx = jnp.maximum(mx, jnp.where(valid, h, VERY_NEGATIVE_NUMBER))
        return h, c, mx

    init = (h_sc[...], c_sc[...], mx_sc[...])
    h, c, mx = lax.fori_loop(0, tc, step, init, unroll=True)
    h_sc[...] = h
    c_sc[...] = c
    mx_sc[...] = mx

    # ---- Phase 3: output projection of the max-pooled state (last chunk) ---
    @pl.when(ti == nt - 1)
    def _finalize():
        # Padded batch rows (length 0) never received a valid step; zero them
        # so -1e30 does not flow through the matmul.
        mx_safe = jnp.where(lens > 0, mx, 0.0)
        logits = (jnp.dot(mx_safe.astype(wout_ref.dtype), wout_ref[...],
                          preferred_element_type=jnp.float32) + bout_ref[...])
        o_ref[...] = logits.astype(o_ref.dtype)


def _round_up(x, m):
    return ((x + m - 1) // m) * m


def _pad_axis(x, axis, new_size):
    pad = [(0, 0)] * x.ndim
    pad[axis] = (0, new_size - x.shape[axis])
    return jnp.pad(x, pad)


def _pad_gate_cols(w, h, hg):
    """(rows, 4*h) -> (rows, 4*hg): zero-pad each of the 4 gate blocks to hg."""
    if h == hg:
        return w
    blocks = [jnp.pad(w[:, g * h:(g + 1) * h], ((0, 0), (0, hg - h)))
              for g in range(4)]
    return jnp.concatenate(blocks, axis=1)


@functools.partial(
    jax.jit, static_argnames=("compute_dtype", "time_chunk", "batch_tile"))
def model_forward_pallas(input_ids, lengths, params,
                         compute_dtype=jnp.bfloat16,
                         time_chunk=8, batch_tile=8):
    """input_ids: (S, B) int32 ; lengths: (B,) int32 ; returns logits (B, C).

    compute_dtype: MXU operand dtype.  bf16 (default) gives peak MXU rate and
    half the operand DMA on every TPU generation; accumulation and all
    element-wise gate math stay float32.  Pass jnp.float32 for strict checks.
    Note: bf16 re-quantizes h each step, so rounding compounds with sequence
    length (validated here at small S with a loose tolerance).
    """
    emb_table = params["embed"]                               # (V, E)
    w_ih, w_hh = params["w_ih"], params["w_hh"]               # (4H,E), (4H,H)
    b_ih, b_hh = params["b_ih"], params["b_hh"]               # (4H,), (4H,)
    w_out, b_out = params["w_out"], params["b_out"]           # (C,H), (C,)

    S, B = input_ids.shape
    E = emb_table.shape[1]
    H = w_hh.shape[1]
    C = w_out.shape[0]

    assert batch_tile % _SUBLANE == 0
    # Per-gate padded width: small H packs all 4 gates into one 128-lane
    # block; large H keeps every gate lane-aligned (multiple of 128).
    if H <= _LANE // 4:
        Hg = _LANE // 4
    else:
        Hg = _round_up(H, _LANE)
    Cp = _round_up(C, _LANE)      # lane-dense output block
    Bt = batch_tile               # sublane-dense batch tile
    Bp = _round_up(B, Bt)
    Tc = min(time_chunk, S)       # bounded unroll / bounded pre-gate scratch
    Sp = _round_up(S, Tc)
    nb = Bp // Bt
    nt = Sp // Tc

    # Embedding gather directly in compute dtype (no f32 (S,B,E) intermediate)
    # then zero-pad time (padded steps are masked by `lens`) and batch.
    # TODO(synk): for large S*B*E gather in-kernel from scalar-prefetched ids
    # instead of materializing the embedded sequence in HBM.
    emb = emb_table.astype(compute_dtype)[input_ids]          # (S, B, E)
    x3d = jnp.pad(emb, ((0, Sp - S), (0, Bp - B), (0, 0)))    # (Sp, Bp, E)

    lens2d = _pad_axis(lengths.astype(jnp.int32), 0, Bp)[:, None]   # (Bp, 1)

    # Parameter repacking: transpose + zero-pad so every gate occupies a full
    # Hg-lane block and padded hidden lanes contribute exactly zero.
    wih_p = _pad_gate_cols(jnp.transpose(w_ih), H, Hg).astype(compute_dtype)
    whh_p = _pad_gate_cols(_pad_axis(jnp.transpose(w_hh), 0, Hg), H,
                           Hg).astype(compute_dtype)
    bias_p = _pad_gate_cols((b_ih + b_hh)[None, :], H, Hg).astype(jnp.float32)
    wout_p = jnp.pad(jnp.transpose(w_out),
                     ((0, Hg - H), (0, Cp - C))).astype(compute_dtype)
    bout_p = jnp.pad(b_out, (0, Cp - C))[None, :].astype(jnp.float32)

    grid_spec = pltpu.PrefetchScalarGridSpec(
        num_scalar_prefetch=0,
        grid=(nb, nt),                                    # (parallel, arbitrary)
        in_specs=[
            pl.BlockSpec((Tc, Bt, E), lambda bi, ti: (ti, bi, 0)),   # x chunk
            pl.BlockSpec((Bt, 1), lambda bi, ti: (bi, 0)),           # lengths
            pl.BlockSpec((E, 4 * Hg), lambda bi, ti: (0, 0)),        # W_ih^T
            pl.BlockSpec((Hg, 4 * Hg), lambda bi, ti: (0, 0)),       # W_hh^T
            pl.BlockSpec((1, 4 * Hg), lambda bi, ti: (0, 0)),        # bias
            pl.BlockSpec((Hg, Cp), lambda bi, ti: (0, 0)),           # W_out^T
            pl.BlockSpec((1, Cp), lambda bi, ti: (0, 0)),            # b_out
        ],
        out_specs=pl.BlockSpec((Bt, Cp), lambda bi, ti: (bi, 0)),
        scratch_shapes=[
            pltpu.VMEM((Tc * Bt, 4 * Hg), jnp.float32),   # chunk pre-gates
            pltpu.VMEM((Bt, Hg), jnp.float32),            # h carry
            pltpu.VMEM((Bt, Hg), jnp.float32),            # c carry
            pltpu.VMEM((Bt, Hg), jnp.float32),            # running-max carry
        ],
    )

    out = pl.pallas_call(
        _lstm_fwd_kernel,
        out_shape=jax.ShapeDtypeStruct((Bp, Cp), jnp.float32),
        grid_spec=grid_spec,
        compiler_params=pltpu.CompilerParams(
            dimension_semantics=("parallel", "arbitrary")),
    )(x3d, lens2d, wih_p, whh_p, bias_p, wout_p, bout_p)

    return out[:B, :C]


def model_forward_reference(input_ids, lengths, params):
    """Pure-JAX reference with identical semantics (for verification)."""
    emb = params["embed"][input_ids].astype(jnp.float32)      # (S, B, E)
    S, B, _ = emb.shape
    H = params["w_hh"].shape[1]
    w_ih, w_hh = params["w_ih"], params["w_hh"]
    bias = params["b_ih"] + params["b_hh"]

    def step(carry, x_t):
        h, c = carry
        gates = x_t @ w_ih.T + h @ w_hh.T + bias
        i_g = jax.nn.sigmoid(gates[:, 0 * H:1 * H])
        f_g = jax.nn.sigmoid(gates[:, 1 * H:2 * H])
        g_g = jnp.tanh(gates[:, 2 * H:3 * H])
        o_g = jax.nn.sigmoid(gates[:, 3 * H:4 * H])
        c = f_g * c + i_g * g_g
        h = o_g * jnp.tanh(c)
        return (h, c), h

    h0 = jnp.zeros((B, H), jnp.float32)
    c0 = jnp.zeros((B, H), jnp.float32)
    _, hs = lax.scan(step, (h0, c0), emb)                     # (S, B, H)

    mask = (jnp.arange(S)[:, None] < lengths[None, :]).astype(jnp.float32)
    masked = hs + ((1.0 - mask) * VERY_NEGATIVE_NUMBER)[:, :, None]
    pooled = jnp.max(masked, axis=0)                          # (B, H)
    return pooled @ params["w_out"].T + params["b_out"]


def init_params(key, vocab_size, emb_dim, hidden_size, nclasses):
    ks = jax.random.split(key, 7)
    s = 0.1
    return {
        "embed": jax.random.normal(ks[0], (vocab_size, emb_dim), jnp.float32) * s,
        "w_ih": jax.random.normal(ks[1], (4 * hidden_size, emb_dim), jnp.float32) * s,
        "w_hh": jax.random.normal(ks[2], (4 * hidden_size, hidden_size), jnp.float32) * s,
        "b_ih": jax.random.normal(ks[3], (4 * hidden_size,), jnp.float32) * s,
        "b_hh": jax.random.normal(ks[4], (4 * hidden_size,), jnp.float32) * s,
        "w_out": jax.random.normal(ks[5], (nclasses, hidden_size), jnp.float32) * s,
        "b_out": jax.random.normal(ks[6], (nclasses,), jnp.float32) * s,
    }


if __name__ == "__main__":
    root = jax.random.PRNGKey(0)

    def run_case(key, vocab, emb, hid, ncls, seq, batch, lengths, dtype, tol):
        k_par, k_ids = jax.random.split(key)
        params = init_params(k_par, vocab, emb, hid, ncls)
        ids = jax.random.randint(k_ids, (seq, batch), 0, vocab, dtype=jnp.int32)
        lens = jnp.array(lengths, dtype=jnp.int32)   # sorted desc, like pack_padded
        ref = model_forward_reference(ids, lens, params)
        out = model_forward_pallas(ids, lens, params, compute_dtype=dtype)
        out = jax.block_until_ready(out)
        assert out.shape == (batch, ncls), out.shape
        assert jnp.allclose(out, ref, atol=tol, rtol=tol), (out, ref)

    k1, k2, k3 = jax.random.split(root, 3)

    # Packed-gate path (H=32 -> single 128-lane gate block): strict f32 check,
    # then bf16 MXU operands (the default) with a loose check.
    run_case(k1, 50, 32, 32, 5, 8, 4, [8, 6, 5, 3], jnp.float32, 1e-4)
    run_case(k1, 50, 32, 32, 5, 8, 4, [8, 6, 5, 3], jnp.bfloat16, 2e-2)

    # Multiple time chunks (S=20 -> three chunks of 8, time-padded) and two
    # batch tiles (B=10 -> Bp=16, padded rows) exercise the carried recurrence.
    run_case(k2, 50, 32, 32, 5, 20, 10,
             [20, 18, 15, 12, 10, 8, 6, 5, 3, 2], jnp.float32, 1e-3)

    # Lane-aligned gate path (H=128 -> per-gate 128-lane aligned slices).
    run_case(k3, 50, 32, 128, 5, 8, 4, [8, 7, 4, 2], jnp.float32, 1e-3)

    # TODO(synk): the multi-attention branch (args.multi_attn) is not exercised
    # by the default forward path and is not implemented here.
    print("KERNEL_OK")
</pallas_src>

<mosaic_0001>
module attributes {stable_mosaic.version = 11 : i64} {
  func.func @_lstm_fwd_kernel(%arg0: i32, %arg1: i32, %arg2: memref<8x8x32xf32, #tpu.memory_space<vmem>>, %arg3: memref<8x1xi32, #tpu.memory_space<vmem>>, %arg4: memref<32x128xf32, #tpu.memory_space<vmem>>, %arg5: memref<32x128xf32, #tpu.memory_space<vmem>>, %arg6: memref<1x128xf32, #tpu.memory_space<vmem>>, %arg7: memref<32x128xf32, #tpu.memory_space<vmem>>, %arg8: memref<1x128xf32, #tpu.memory_space<vmem>>, %arg9: memref<8x128xf32, #tpu.memory_space<vmem>>, %arg10: memref<64x128xf32, #tpu.memory_space<vmem>>, %arg11: memref<8x32xf32, #tpu.memory_space<vmem>>, %arg12: memref<8x32xf32, #tpu.memory_space<vmem>>, %arg13: memref<8x32xf32, #tpu.memory_space<vmem>>) attributes {dimension_semantics = [#tpu.dimension_semantics<parallel>, #tpu.dimension_semantics<arbitrary>], iteration_bounds = array<i64: 1, 1>, scalar_prefetch = 0 : i64, scratch_operands = 4 : i64, tpu.core_type = #tpu.core_type<tc>, window_params = [{transform_indices = @transform_0, window_bounds = array<i64: 8, 8, 32>}, {transform_indices = @transform_1, window_bounds = array<i64: 8, 1>}, {pipeline_mode = #tpu.pipeline_mode<synchronous>, transform_indices = @transform_2, window_bounds = array<i64: 32, 128>}, {pipeline_mode = #tpu.pipeline_mode<synchronous>, transform_indices = @transform_3, window_bounds = array<i64: 32, 128>}, {pipeline_mode = #tpu.pipeline_mode<synchronous>, transform_indices = @transform_4, window_bounds = array<i64: 1, 128>}, {pipeline_mode = #tpu.pipeline_mode<synchronous>, transform_indices = @transform_5, window_bounds = array<i64: 32, 128>}, {pipeline_mode = #tpu.pipeline_mode<synchronous>, transform_indices = @transform_6, window_bounds = array<i64: 1, 128>}, {transform_indices = @transform_7, window_bounds = array<i64: 8, 128>}]} {
    %c0_i32 = arith.constant 0 : i32
    %0 = arith.cmpi eq, %arg1, %c0_i32 : i32
    %1 = arith.extui %0 : i1 to i32
    %c0_i32_0 = arith.constant 0 : i32
    %2 = arith.cmpi ne, %1, %c0_i32_0 : i32
    scf.if %2 {
      %cst_69 = arith.constant 0.000000e+00 : f32
      %269 = vector.broadcast %cst_69 : f32 to vector<8x32xf32>
      %c0_70 = arith.constant 0 : index
      %c0_71 = arith.constant 0 : index
      %270 = vector.load %arg11[%c0_70, %c0_71] : memref<8x32xf32, #tpu.memory_space<vmem>>, vector<8x32xf32>
      tpu.vector_store %arg11[%c0_70, %c0_71], %269 {strides = array<i32>} : memref<8x32xf32, #tpu.memory_space<vmem>>, vector<8x32xf32>,
      %cst_72 = arith.constant 0.000000e+00 : f32
      %271 = vector.broadcast %cst_72 : f32 to vector<8x32xf32>
      %c0_73 = arith.constant 0 : index
      %c0_74 = arith.constant 0 : index
      %272 = vector.load %arg12[%c0_73, %c0_74] : memref<8x32xf32, #tpu.memory_space<vmem>>, vector<8x32xf32>
      tpu.vector_store %arg12[%c0_73, %c0_74], %271 {strides = array<i32>} : memref<8x32xf32, #tpu.memory_space<vmem>>, vector<8x32xf32>,
      %cst_75 = arith.constant -1.000000e+30 : f32
      %273 = vector.broadcast %cst_75 : f32 to vector<8x32xf32>
      %c0_76 = arith.constant 0 : index
      %c0_77 = arith.constant 0 : index
      %274 = vector.load %arg13[%c0_76, %c0_77] : memref<8x32xf32, #tpu.memory_space<vmem>>, vector<8x32xf32>
      tpu.vector_store %arg13[%c0_76, %c0_77], %273 {strides = array<i32>} : memref<8x32xf32, #tpu.memory_space<vmem>>, vector<8x32xf32>,
    } else {
    }
    %c0 = arith.constant 0 : index
    %c0_1 = arith.constant 0 : index
    %c0_2 = arith.constant 0 : index
    %3 = vector.load %arg2[%c0, %c0_1, %c0_2] : memref<8x8x32xf32, #tpu.memory_space<vmem>>, vector<8x8x32xf32>
    %4 = vector.shape_cast %3 : vector<8x8x32xf32> to vector<64x32xf32>
    %c0_3 = arith.constant 0 : index
    %c0_4 = arith.constant 0 : index
    %5 = vector.load %arg4[%c0_3, %c0_4] : memref<32x128xf32, #tpu.memory_space<vmem>>, vector<32x128xf32>
    %cst = arith.constant dense<0.000000e+00> : vector<64x128xf32>
    %6 = tpu.matmul %4, %5, %cst {dimension_numbers = #tpu.dot_dimension_numbers<[1], [0], [0], [1], [0, 0, 1, 1], [], []>} : vector<64x32xf32>, vector<32x128xf32>, vector<64x128xf32> -> vector<64x128xf32>
    %c0_5 = arith.constant 0 : index
    %c0_6 = arith.constant 0 : index
    %7 = vector.load %arg6[%c0_5, %c0_6] : memref<1x128xf32, #tpu.memory_space<vmem>>, vector<1x128xf32>
    %8 = vector.broadcast %7 : vector<1x128xf32> to vector<64x128xf32>
    %9 = arith.addf %6, %8 : vector<64x128xf32>
    %c0_7 = arith.constant 0 : index
    %c0_8 = arith.constant 0 : index
    %10 = vector.load %arg10[%c0_7, %c0_8] : memref<64x128xf32, #tpu.memory_space<vmem>>, vector<64x128xf32>
    tpu.vector_store %arg10[%c0_7, %c0_8], %9 {strides = array<i32>} : memref<64x128xf32, #tpu.memory_space<vmem>>, vector<64x128xf32>,
    %c0_9 = arith.constant 0 : index
    %c0_10 = arith.constant 0 : index
    %11 = vector.load %arg5[%c0_9, %c0_10] : memref<32x128xf32, #tpu.memory_space<vmem>>, vector<32x128xf32>
    %c0_11 = arith.constant 0 : index
    %c0_12 = arith.constant 0 : index
    %12 = vector.load %arg3[%c0_11, %c0_12] : memref<8x1xi32, #tpu.memory_space<vmem>>, vector<8x1xi32>
    %c8_i32 = arith.constant 8 : i32
    %13 = arith.muli %arg1, %c8_i32 : i32
    %14 = tpu.iota {dimensions = array<i32: 1>} : vector<8x128xi32>
    %c64_i32 = arith.constant 64 : i32
    %15 = vector.broadcast %c64_i32 : i32 to vector<8x128xi32>
    %16 = arith.cmpi sge, %14, %15 : vector<8x128xi32>
    %c96_i32 = arith.constant 96 : i32
    %17 = vector.broadcast %c96_i32 : i32 to vector<8x128xi32>
    %18 = arith.cmpi slt, %14, %17 : vector<8x128xi32>
    %19 = arith.andi %16, %18 : vector<8x128xi1>
    %c0_13 = arith.constant 0 : index
    %c0_14 = arith.constant 0 : index
    %20 = vector.load %arg11[%c0_13, %c0_14] : memref<8x32xf32, #tpu.memory_space<vmem>>, vector<8x32xf32>
    %c0_15 = arith.constant 0 : index
    %c0_16 = arith.constant 0 : index
    %21 = vector.load %arg12[%c0_15, %c0_16] : memref<8x32xf32, #tpu.memory_space<vmem>>, vector<8x32xf32>
    %c0_17 = arith.constant 0 : index
    %c0_18 = arith.constant 0 : index
    %22 = vector.load %arg13[%c0_17, %c0_18] : memref<8x32xf32, #tpu.memory_space<vmem>>, vector<8x32xf32>
    %c0_i32_19 = arith.constant 0 : i32
    %c8_i32_20 = arith.constant 8 : i32
    %23 = arith.muli %c0_i32_19, %c8_i32_20 : i32
    %24 = tpu.assume_multiple %23, 8 : i32
    %25 = arith.index_cast %24 : i32 to index
    %c0_21 = arith.constant 0 : index
    %26 = vector.load %arg10[%25, %c0_21] : memref<64x128xf32, #tpu.memory_space<vmem>>, vector<8x128xf32>
    %cst_22 = arith.constant dense<0.000000e+00> : vector<8x128xf32>
    %27 = tpu.matmul %20, %11, %cst_22 {dimension_numbers = #tpu.dot_dimension_numbers<[1], [0], [0], [1], [0, 0, 1, 1], [], []>} : vector<8x32xf32>, vector<32x128xf32>, vector<8x128xf32> -> vector<8x128xf32>
    %28 = arith.addf %26, %27 : vector<8x128xf32>
    %29 = math.tanh %28 : vector<8x128xf32>
    %30 = arith.negf %28 : vector<8x128xf32>
    %31 = math.exp %30 : vector<8x128xf32>
    %cst_23 = arith.constant 1.000000e+00 : f32
    %32 = vector.broadcast %cst_23 : f32 to vector<8x128xf32>
    %33 = arith.addf %32, %31 : vector<8x128xf32>
    %34 = arith.divf %32, %33 : vector<8x128xf32>
    %35 = arith.select %19, %29, %34 : vector<8x128xi1>, vector<8x128xf32>
    %36 = vector.extract_strided_slice %35 {offsets = [0, 0], sizes = [8, 32], strides = [1, 1]} : vector<8x128xf32> to vector<8x32xf32>
    %37 = vector.extract_strided_slice %35 {offsets = [0, 32], sizes = [8, 32], strides = [1, 1]} : vector<8x128xf32> to vector<8x32xf32>
    %38 = vector.extract_strided_slice %35 {offsets = [0, 64], sizes = [8, 32], strides = [1, 1]} : vector<8x128xf32> to vector<8x32xf32>
    %39 = vector.extract_strided_slice %35 {offsets = [0, 96], sizes = [8, 32], strides = [1, 1]} : vector<8x128xf32> to vector<8x32xf32>
    %40 = arith.mulf %37, %21 : vector<8x32xf32>
    %41 = arith.mulf %36, %38 : vector<8x32xf32>
    %42 = arith.addf %40, %41 : vector<8x32xf32>
    %43 = math.tanh %42 : vector<8x32xf32>
    %44 = arith.mulf %39, %43 : vector<8x32xf32>
    %45 = arith.addi %13, %c0_i32_19 : i32
    %46 = vector.broadcast %45 : i32 to vector<8x1xi32>
    %47 = arith.cmpi sgt, %12, %46 : vector<8x1xi32>
    %cst_24 = arith.constant -1.000000e+30 : f32
    %48 = vector.shape_cast %47 : vector<8x1xi1> to vector<8x1xi1>
    %49 = vector.broadcast %48 : vector<8x1xi1> to vector<8x32xi1>
    %50 = vector.broadcast %cst_24 : f32 to vector<8x32xf32>
    %51 = arith.select %49, %44, %50 : vector<8x32xi1>, vector<8x32xf32>
    %52 = arith.maximumf %22, %51 : vector<8x32xf32>
    %c1_i32 = arith.constant 1 : i32
    %c8_i32_25 = arith.constant 8 : i32
    %53 = arith.muli %c1_i32, %c8_i32_25 : i32
    %54 = tpu.assume_multiple %53, 8 : i32
    %55 = arith.index_cast %54 : i32 to index
    %c0_26 = arith.constant 0 : index
    %56 = vector.load %arg10[%55, %c0_26] : memref<64x128xf32, #tpu.memory_space<vmem>>, vector<8x128xf32>
    %cst_27 = arith.constant dense<0.000000e+00> : vector<8x128xf32>
    %57 = tpu.matmul %44, %11, %cst_27 {dimension_numbers = #tpu.dot_dimension_numbers<[1], [0], [0], [1], [0, 0, 1, 1], [], []>} : vector<8x32xf32>, vector<32x128xf32>, vector<8x128xf32> -> vector<8x128xf32>
    %58 = arith.addf %56, %57 : vector<8x128xf32>
    %59 = math.tanh %58 : vector<8x128xf32>
    %60 = arith.negf %58 : vector<8x128xf32>
    %61 = math.exp %60 : vector<8x128xf32>
    %cst_28 = arith.constant 1.000000e+00 : f32
    %62 = vector.broadcast %cst_28 : f32 to vector<8x128xf32>
    %63 = arith.addf %62, %61 : vector<8x128xf32>
    %64 = arith.divf %62, %63 : vector<8x128xf32>
    %65 = arith.select %19, %59, %64 : vector<8x128xi1>, vector<8x128xf32>
    %66 = vector.extract_strided_slice %65 {offsets = [0, 0], sizes = [8, 32], strides = [1, 1]} : vector<8x128xf32> to vector<8x32xf32>
    %67 = vector.extract_strided_slice %65 {offsets = [0, 32], sizes = [8, 32], strides = [1, 1]} : vector<8x128xf32> to vector<8x32xf32>
    %68 = vector.extract_strided_slice %65 {offsets = [0, 64], sizes = [8, 32], strides = [1, 1]} : vector<8x128xf32> to vector<8x32xf32>
    %69 = vector.extract_strided_slice %65 {offsets = [0, 96], sizes = [8, 32], strides = [1, 1]} : vector<8x128xf32> to vector<8x32xf32>
    %70 = arith.mulf %67, %42 : vector<8x32xf32>
    %71 = arith.mulf %66, %68 : vector<8x32xf32>
    %72 = arith.addf %70, %71 : vector<8x32xf32>
    %73 = math.tanh %72 : vector<8x32xf32>
    %74 = arith.mulf %69, %73 : vector<8x32xf32>
    %75 = arith.addi %13, %c1_i32 : i32
    %76 = vector.broadcast %75 : i32 to vector<8x1xi32>
    %77 = arith.cmpi sgt, %12, %76 : vector<8x1xi32>
    %cst_29 = arith.constant -1.000000e+30 : f32
    %78 = vector.shape_cast %77 : vector<8x1xi1> to vector<8x1xi1>
    %79 = vector.broadcast %78 : vector<8x1xi1> to vector<8x32xi1>
    %80 = vector.broadcast %cst_29 : f32 to vector<8x32xf32>
    %81 = arith.select %79, %74, %80 : vector<8x32xi1>, vector<8x32xf32>
    %82 = arith.maximumf %52, %81 : vector<8x32xf32>
    %c2_i32 = arith.constant 2 : i32
    %c8_i32_30 = arith.constant 8 : i32
    %83 = arith.muli %c2_i32, %c8_i32_30 : i32
    %84 = tpu.assume_multiple %83, 8 : i32
    %85 = arith.index_cast %84 : i32 to index
    %c0_31 = arith.constant 0 : index
    %86 = vector.load %arg10[%85, %c0_31] : memref<64x128xf32, #tpu.memory_space<vmem>>, vector<8x128xf32>
    %cst_32 = arith.constant dense<0.000000e+00> : vector<8x128xf32>
    %87 = tpu.matmul %74, %11, %cst_32 {dimension_numbers = #tpu.dot_dimension_numbers<[1], [0], [0], [1], [0, 0, 1, 1], [], []>} : vector<8x32xf32>, vector<32x128xf32>, vector<8x128xf32> -> vector<8x128xf32>
    %88 = arith.addf %86, %87 : vector<8x128xf32>
    %89 = math.tanh %88 : vector<8x128xf32>
    %90 = arith.negf %88 : vector<8x128xf32>
    %91 = math.exp %90 : vector<8x128xf32>
    %cst_33 = arith.constant 1.000000e+00 : f32
    %92 = vector.broadcast %cst_33 : f32 to vector<8x128xf32>
    %93 = arith.addf %92, %91 : vector<8x128xf32>
    %94 = arith.divf %92, %93 : vector<8x128xf32>
    %95 = arith.select %19, %89, %94 : vector<8x128xi1>, vector<8x128xf32>
    %96 = vector.extract_strided_slice %95 {offsets = [0, 0], sizes = [8, 32], strides = [1, 1]} : vector<8x128xf32> to vector<8x32xf32>
    %97 = vector.extract_strided_slice %95 {offsets = [0, 32], sizes = [8, 32], strides = [1, 1]} : vector<8x128xf32> to vector<8x32xf32>
    %98 = vector.extract_strided_slice %95 {offsets = [0, 64], sizes = [8, 32], strides = [1, 1]} : vector<8x128xf32> to vector<8x32xf32>
    %99 = vector.extract_strided_slice %95 {offsets = [0, 96], sizes = [8, 32], strides = [1, 1]} : vector<8x128xf32> to vector<8x32xf32>
    %100 = arith.mulf %97, %72 : vector<8x32xf32>
    %101 = arith.mulf %96, %98 : vector<8x32xf32>
    %102 = arith.addf %100, %101 : vector<8x32xf32>
    %103 = math.tanh %102 : vector<8x32xf32>
    %104 = arith.mulf %99, %103 : vector<8x32xf32>
    %105 = arith.addi %13, %c2_i32 : i32
    %106 = vector.broadcast %105 : i32 to vector<8x1xi32>
    %107 = arith.cmpi sgt, %12, %106 : vector<8x1xi32>
    %cst_34 = arith.constant -1.000000e+30 : f32
    %108 = vector.shape_cast %107 : vector<8x1xi1> to vector<8x1xi1>
    %109 = vector.broadcast %108 : vector<8x1xi1> to vector<8x32xi1>
    %110 = vector.broadcast %cst_34 : f32 to vector<8x32xf32>
    %111 = arith.select %109, %104, %110 : vector<8x32xi1>, vector<8x32xf32>
    %112 = arith.maximumf %82, %111 : vector<8x32xf32>
    %c3_i32 = arith.constant 3 : i32
    %c8_i32_35 = arith.constant 8 : i32
    %113 = arith.muli %c3_i32, %c8_i32_35 : i32
    %114 = tpu.assume_multiple %113, 8 : i32
    %115 = arith.index_cast %114 : i32 to index
    %c0_36 = arith.constant 0 : index
    %116 = vector.load %arg10[%115, %c0_36] : memref<64x128xf32, #tpu.memory_space<vmem>>, vector<8x128xf32>
    %cst_37 = arith.constant dense<0.000000e+00> : vector<8x128xf32>
    %117 = tpu.matmul %104, %11, %cst_37 {dimension_numbers = #tpu.dot_dimension_numbers<[1], [0], [0], [1], [0, 0, 1, 1], [], []>} : vector<8x32xf32>, vector<32x128xf32>, vector<8x128xf32> -> vector<8x128xf32>
    %118 = arith.addf %116, %117 : vector<8x128xf32>
    %119 = math.tanh %118 : vector<8x128xf32>
    %120 = arith.negf %118 : vector<8x128xf32>
    %121 = math.exp %120 : vector<8x128xf32>
    %cst_38 = arith.constant 1.000000e+00 : f32
    %122 = vector.broadcast %cst_38 : f32 to vector<8x128xf32>
    %123 = arith.addf %122, %121 : vector<8x128xf32>
    %124 = arith.divf %122, %123 : vector<8x128xf32>
    %125 = arith.select %19, %119, %124 : vector<8x128xi1>, vector<8x128xf32>
    %126 = vector.extract_strided_slice %125 {offsets = [0, 0], sizes = [8, 32], strides = [1, 1]} : vector<8x128xf32> to vector<8x32xf32>
    %127 = vector.extract_strided_slice %125 {offsets = [0, 32], sizes = [8, 32], strides = [1, 1]} : vector<8x128xf32> to vector<8x32xf32>
    %128 = vector.extract_strided_slice %125 {offsets = [0, 64], sizes = [8, 32], strides = [1, 1]} : vector<8x128xf32> to vector<8x32xf32>
    %129 = vector.extract_strided_slice %125 {offsets = [0, 96], sizes = [8, 32], strides = [1, 1]} : vector<8x128xf32> to vector<8x32xf32>
    %130 = arith.mulf %127, %102 : vector<8x32xf32>
    %131 = arith.mulf %126, %128 : vector<8x32xf32>
    %132 = arith.addf %130, %131 : vector<8x32xf32>
    %133 = math.tanh %132 : vector<8x32xf32>
    %134 = arith.mulf %129, %133 : vector<8x32xf32>
    %135 = arith.addi %13, %c3_i32 : i32
    %136 = vector.broadcast %135 : i32 to vector<8x1xi32>
    %137 = arith.cmpi sgt, %12, %136 : vector<8x1xi32>
    %cst_39 = arith.constant -1.000000e+30 : f32
    %138 = vector.shape_cast %137 : vector<8x1xi1> to vector<8x1xi1>
    %139 = vector.broadcast %138 : vector<8x1xi1> to vector<8x32xi1>
    %140 = vector.broadcast %cst_39 : f32 to vector<8x32xf32>
    %141 = arith.select %139, %134, %140 : vector<8x32xi1>, vector<8x32xf32>
    %142 = arith.maximumf %112, %141 : vector<8x32xf32>
    %c4_i32 = arith.constant 4 : i32
    %c8_i32_40 = arith.constant 8 : i32
    %143 = arith.muli %c4_i32, %c8_i32_40 : i32
    %144 = tpu.assume_multiple %143, 8 : i32
    %145 = arith.index_cast %144 : i32 to index
    %c0_41 = arith.constant 0 : index
    %146 = vector.load %arg10[%145, %c0_41] : memref<64x128xf32, #tpu.memory_space<vmem>>, vector<8x128xf32>
    %cst_42 = arith.constant dense<0.000000e+00> : vector<8x128xf32>
    %147 = tpu.matmul %134, %11, %cst_42 {dimension_numbers = #tpu.dot_dimension_numbers<[1], [0], [0], [1], [0, 0, 1, 1], [], []>} : vector<8x32xf32>, vector<32x128xf32>, vector<8x128xf32> -> vector<8x128xf32>
    %148 = arith.addf %146, %147 : vector<8x128xf32>
    %149 = math.tanh %148 : vector<8x128xf32>
    %150 = arith.negf %148 : vector<8x128xf32>
    %151 = math.exp %150 : vector<8x128xf32>
    %cst_43 = arith.constant 1.000000e+00 : f32
    %152 = vector.broadcast %cst_43 : f32 to vector<8x128xf32>
    %153 = arith.addf %152, %151 : vector<8x128xf32>
    %154 = arith.divf %152, %153 : vector<8x128xf32>
    %155 = arith.select %19, %149, %154 : vector<8x128xi1>, vector<8x128xf32>
    %156 = vector.extract_strided_slice %155 {offsets = [0, 0], sizes = [8, 32], strides = [1, 1]} : vector<8x128xf32> to vector<8x32xf32>
    %157 = vector.extract_strided_slice %155 {offsets = [0, 32], sizes = [8, 32], strides = [1, 1]} : vector<8x128xf32> to vector<8x32xf32>
    %158 = vector.extract_strided_slice %155 {offsets = [0, 64], sizes = [8, 32], strides = [1, 1]} : vector<8x128xf32> to vector<8x32xf32>
    %159 = vector.extract_strided_slice %155 {offsets = [0, 96], sizes = [8, 32], strides = [1, 1]} : vector<8x128xf32> to vector<8x32xf32>
    %160 = arith.mulf %157, %132 : vector<8x32xf32>
    %161 = arith.mulf %156, %158 : vector<8x32xf32>
    %162 = arith.addf %160, %161 : vector<8x32xf32>
    %163 = math.tanh %162 : vector<8x32xf32>
    %164 = arith.mulf %159, %163 : vector<8x32xf32>
    %165 = arith.addi %13, %c4_i32 : i32
    %166 = vector.broadcast %165 : i32 to vector<8x1xi32>
    %167 = arith.cmpi sgt, %12, %166 : vector<8x1xi32>
    %cst_44 = arith.constant -1.000000e+30 : f32
    %168 = vector.shape_cast %167 : vector<8x1xi1> to vector<8x1xi1>
    %169 = vector.broadcast %168 : vector<8x1xi1> to vector<8x32xi1>
    %170 = vector.broadcast %cst_44 : f32 to vector<8x32xf32>
    %171 = arith.select %169, %164, %170 : vector<8x32xi1>, vector<8x32xf32>
    %172 = arith.maximumf %142, %171 : vector<8x32xf32>
    %c5_i32 = arith.constant 5 : i32
    %c8_i32_45 = arith.constant 8 : i32
    %173 = arith.muli %c5_i32, %c8_i32_45 : i32
    %174 = tpu.assume_multiple %173, 8 : i32
    %175 = arith.index_cast %174 : i32 to index
    %c0_46 = arith.constant 0 : index
    %176 = vector.load %arg10[%175, %c0_46] : memref<64x128xf32, #tpu.memory_space<vmem>>, vector<8x128xf32>
    %cst_47 = arith.constant dense<0.000000e+00> : vector<8x128xf32>
    %177 = tpu.matmul %164, %11, %cst_47 {dimension_numbers = #tpu.dot_dimension_numbers<[1], [0], [0], [1], [0, 0, 1, 1], [], []>} : vector<8x32xf32>, vector<32x128xf32>, vector<8x128xf32> -> vector<8x128xf32>
    %178 = arith.addf %176, %177 : vector<8x128xf32>
    %179 = math.tanh %178 : vector<8x128xf32>
    %180 = arith.negf %178 : vector<8x128xf32>
    %181 = math.exp %180 : vector<8x128xf32>
    %cst_48 = arith.constant 1.000000e+00 : f32
    %182 = vector.broadcast %cst_48 : f32 to vector<8x128xf32>
    %183 = arith.addf %182, %181 : vector<8x128xf32>
    %184 = arith.divf %182, %183 : vector<8x128xf32>
    %185 = arith.select %19, %179, %184 : vector<8x128xi1>, vector<8x128xf32>
    %186 = vector.extract_strided_slice %185 {offsets = [0, 0], sizes = [8, 32], strides = [1, 1]} : vector<8x128xf32> to vector<8x32xf32>
    %187 = vector.extract_strided_slice %185 {offsets = [0, 32], sizes = [8, 32], strides = [1, 1]} : vector<8x128xf32> to vector<8x32xf32>
    %188 = vector.extract_strided_slice %185 {offsets = [0, 64], sizes = [8, 32], strides = [1, 1]} : vector<8x128xf32> to vector<8x32xf32>
    %189 = vector.extract_strided_slice %185 {offsets = [0, 96], sizes = [8, 32], strides = [1, 1]} : vector<8x128xf32> to vector<8x32xf32>
    %190 = arith.mulf %187, %162 : vector<8x32xf32>
    %191 = arith.mulf %186, %188 : vector<8x32xf32>
    %192 = arith.addf %190, %191 : vector<8x32xf32>
    %193 = math.tanh %192 : vector<8x32xf32>
    %194 = arith.mulf %189, %193 : vector<8x32xf32>
    %195 = arith.addi %13, %c5_i32 : i32
    %196 = vector.broadcast %195 : i32 to vector<8x1xi32>
    %197 = arith.cmpi sgt, %12, %196 : vector<8x1xi32>
    %cst_49 = arith.constant -1.000000e+30 : f32
    %198 = vector.shape_cast %197 : vector<8x1xi1> to vector<8x1xi1>
    %199 = vector.broadcast %198 : vector<8x1xi1> to vector<8x32xi1>
    %200 = vector.broadcast %cst_49 : f32 to vector<8x32xf32>
    %201 = arith.select %199, %194, %200 : vector<8x32xi1>, vector<8x32xf32>
    %202 = arith.maximumf %172, %201 : vector<8x32xf32>
    %c6_i32 = arith.constant 6 : i32
    %c8_i32_50 = arith.constant 8 : i32
    %203 = arith.muli %c6_i32, %c8_i32_50 : i32
    %204 = tpu.assume_multiple %203, 8 : i32
    %205 = arith.index_cast %204 : i32 to index
    %c0_51 = arith.constant 0 : index
    %206 = vector.load %arg10[%205, %c0_51] : memref<64x128xf32, #tpu.memory_space<vmem>>, vector<8x128xf32>
    %cst_52 = arith.constant dense<0.000000e+00> : vector<8x128xf32>
    %207 = tpu.matmul %194, %11, %cst_52 {dimension_numbers = #tpu.dot_dimension_numbers<[1], [0], [0], [1], [0, 0, 1, 1], [], []>} : vector<8x32xf32>, vector<32x128xf32>, vector<8x128xf32> -> vector<8x128xf32>
    %208 = arith.addf %206, %207 : vector<8x128xf32>
    %209 = math.tanh %208 : vector<8x128xf32>
    %210 = arith.negf %208 : vector<8x128xf32>
    %211 = math.exp %210 : vector<8x128xf32>
    %cst_53 = arith.constant 1.000000e+00 : f32
    %212 = vector.broadcast %cst_53 : f32 to vector<8x128xf32>
    %213 = arith.addf %212, %211 : vector<8x128xf32>
    %214 = arith.divf %212, %213 : vector<8x128xf32>
    %215 = arith.select %19, %209, %214 : vector<8x128xi1>, vector<8x128xf32>
    %216 = vector.extract_strided_slice %215 {offsets = [0, 0], sizes = [8, 32], strides = [1, 1]} : vector<8x128xf32> to vector<8x32xf32>
    %217 = vector.extract_strided_slice %215 {offsets = [0, 32], sizes = [8, 32], strides = [1, 1]} : vector<8x128xf32> to vector<8x32xf32>
    %218 = vector.extract_strided_slice %215 {offsets = [0, 64], sizes = [8, 32], strides = [1, 1]} : vector<8x128xf32> to vector<8x32xf32>
    %219 = vector.extract_strided_slice %215 {offsets = [0, 96], sizes = [8, 32], strides = [1, 1]} : vector<8x128xf32> to vector<8x32xf32>
    %220 = arith.mulf %217, %192 : vector<8x32xf32>
    %221 = arith.mulf %216, %218 : vector<8x32xf32>
    %222 = arith.addf %220, %221 : vector<8x32xf32>
    %223 = math.tanh %222 : vector<8x32xf32>
    %224 = arith.mulf %219, %223 : vector<8x32xf32>
    %225 = arith.addi %13, %c6_i32 : i32
    %226 = vector.broadcast %225 : i32 to vector<8x1xi32>
    %227 = arith.cmpi sgt, %12, %226 : vector<8x1xi32>
    %cst_54 = arith.constant -1.000000e+30 : f32
    %228 = vector.shape_cast %227 : vector<8x1xi1> to vector<8x1xi1>
    %229 = vector.broadcast %228 : vector<8x1xi1> to vector<8x32xi1>
    %230 = vector.broadcast %cst_54 : f32 to vector<8x32xf32>
    %231 = arith.select %229, %224, %230 : vector<8x32xi1>, vector<8x32xf32>
    %232 = arith.maximumf %202, %231 : vector<8x32xf32>
    %c7_i32 = arith.constant 7 : i32
    %c8_i32_55 = arith.constant 8 : i32
    %233 = arith.muli %c7_i32, %c8_i32_55 : i32
    %234 = tpu.assume_multiple %233, 8 : i32
    %235 = arith.index_cast %234 : i32 to index
    %c0_56 = arith.constant 0 : index
    %236 = vector.load %arg10[%235, %c0_56] : memref<64x128xf32, #tpu.memory_space<vmem>>, vector<8x128xf32>
    %cst_57 = arith.constant dense<0.000000e+00> : vector<8x128xf32>
    %237 = tpu.matmul %224, %11, %cst_57 {dimension_numbers = #tpu.dot_dimension_numbers<[1], [0], [0], [1], [0, 0, 1, 1], [], []>} : vector<8x32xf32>, vector<32x128xf32>, vector<8x128xf32> -> vector<8x128xf32>
    %238 = arith.addf %236, %237 : vector<8x128xf32>
    %239 = math.tanh %238 : vector<8x128xf32>
    %240 = arith.negf %238 : vector<8x128xf32>
    %241 = math.exp %240 : vector<8x128xf32>
    %cst_58 = arith.constant 1.000000e+00 : f32
    %242 = vector.broadcast %cst_58 : f32 to vector<8x128xf32>
    %243 = arith.addf %242, %241 : vector<8x128xf32>
    %244 = arith.divf %242, %243 : vector<8x128xf32>
    %245 = arith.select %19, %239, %244 : vector<8x128xi1>, vector<8x128xf32>
    %246 = vector.extract_strided_slice %245 {offsets = [0, 0], sizes = [8, 32], strides = [1, 1]} : vector<8x128xf32> to vector<8x32xf32>
    %247 = vector.extract_strided_slice %245 {offsets = [0, 32], sizes = [8, 32], strides = [1, 1]} : vector<8x128xf32> to vector<8x32xf32>
    %248 = vector.extract_strided_slice %245 {offsets = [0, 64], sizes = [8, 32], strides = [1, 1]} : vector<8x128xf32> to vector<8x32xf32>
    %249 = vector.extract_strided_slice %245 {offsets = [0, 96], sizes = [8, 32], strides = [1, 1]} : vector<8x128xf32> to vector<8x32xf32>
    %250 = arith.mulf %247, %222 : vector<8x32xf32>
    %251 = arith.mulf %246, %248 : vector<8x32xf32>
    %252 = arith.addf %250, %251 : vector<8x32xf32>
    %253 = math.tanh %252 : vector<8x32xf32>
    %254 = arith.mulf %249, %253 : vector<8x32xf32>
    %255 = arith.addi %13, %c7_i32 : i32
    %256 = vector.broadcast %255 : i32 to vector<8x1xi32>
    %257 = arith.cmpi sgt, %12, %256 : vector<8x1xi32>
    %cst_59 = arith.constant -1.000000e+30 : f32
    %258 = vector.shape_cast %257 : vector<8x1xi1> to vector<8x1xi1>
    %259 = vector.broadcast %258 : vector<8x1xi1> to vector<8x32xi1>
    %260 = vector.broadcast %cst_59 : f32 to vector<8x32xf32>
    %261 = arith.select %259, %254, %260 : vector<8x32xi1>, vector<8x32xf32>
    %262 = arith.maximumf %232, %261 : vector<8x32xf32>
    %c8_i32_60 = arith.constant 8 : i32
    %c0_61 = arith.constant 0 : index
    %c0_62 = arith.constant 0 : index
    %263 = vector.load %arg11[%c0_61, %c0_62] : memref<8x32xf32, #tpu.memory_space<vmem>>, vector<8x32xf32>
    tpu.vector_store %arg11[%c0_61, %c0_62], %254 {strides = array<i32>} : memref<8x32xf32, #tpu.memory_space<vmem>>, vector<8x32xf32>,
    %c0_63 = arith.constant 0 : index
    %c0_64 = arith.constant 0 : index
    %264 = vector.load %arg12[%c0_63, %c0_64] : memref<8x32xf32, #tpu.memory_space<vmem>>, vector<8x32xf32>
    tpu.vector_store %arg12[%c0_63, %c0_64], %252 {strides = array<i32>} : memref<8x32xf32, #tpu.memory_space<vmem>>, vector<8x32xf32>,
    %c0_65 = arith.constant 0 : index
    %c0_66 = arith.constant 0 : index
    %265 = vector.load %arg13[%c0_65, %c0_66] : memref<8x32xf32, #tpu.memory_space<vmem>>, vector<8x32xf32>
    tpu.vector_store %arg13[%c0_65, %c0_66], %262 {strides = array<i32>} : memref<8x32xf32, #tpu.memory_space<vmem>>, vector<8x32xf32>,
    %c0_i32_67 = arith.constant 0 : i32
    %266 = arith.cmpi eq, %arg1, %c0_i32_67 : i32
    %267 = arith.extui %266 : i1 to i32
    %c0_i32_68 = arith.constant 0 : i32
    %268 = arith.cmpi ne, %267, %c0_i32_68 : i32
    scf.if %268 {
      %c0_i32_69 = arith.constant 0 : i32
      %269 = vector.broadcast %c0_i32_69 : i32 to vector<8x1xi32>
      %270 = arith.cmpi sgt, %12, %269 : vector<8x1xi32>
      %cst_70 = arith.constant 0.000000e+00 : f32
      %271 = vector.shape_cast %270 : vector<8x1xi1> to vector<8x1xi1>
      %272 = vector.broadcast %271 : vector<8x1xi1> to vector<8x32xi1>
      %273 = vector.broadcast %cst_70 : f32 to vector<8x32xf32>
      %274 = arith.select %272, %262, %273 : vector<8x32xi1>, vector<8x32xf32>
      %c0_71 = arith.constant 0 : index
      %c0_72 = arith.constant 0 : index
      %275 = vector.load %arg7[%c0_71, %c0_72] : memref<32x128xf32, #tpu.memory_space<vmem>>, vector<32x128xf32>
      %cst_73 = arith.constant dense<0.000000e+00> : vector<8x128xf32>
      %276 = tpu.matmul %274, %275, %cst_73 {dimension_numbers = #tpu.dot_dimension_numbers<[1], [0], [0], [1], [0, 0, 1, 1], [], []>} : vector<8x32xf32>, vector<32x128xf32>, vector<8x128xf32> -> vector<8x128xf32>
      %c0_74 = arith.constant 0 : index
      %c0_75 = arith.constant 0 : index
      %277 = vector.load %arg8[%c0_74, %c0_75] : memref<1x128xf32, #tpu.memory_space<vmem>>, vector<1x128xf32>
      %278 = vector.broadcast %277 : vector<1x128xf32> to vector<8x128xf32>
      %279 = arith.addf %276, %278 : vector<8x128xf32>
      %c0_76 = arith.constant 0 : index
      %c0_77 = arith.constant 0 : index
      %280 = vector.load %arg9[%c0_76, %c0_77] : memref<8x128xf32, #tpu.memory_space<vmem>>, vector<8x128xf32>
      tpu.vector_store %arg9[%c0_76, %c0_77], %279 {strides = array<i32>} : memref<8x128xf32, #tpu.memory_space<vmem>>, vector<8x128xf32>,
    } else {
    }
    return
  }
  func.func @transform_0(%arg0: i32, %arg1: i32) -> (i32, i32, i32) {
    %c0_i32 = arith.constant 0 : i32
    %c0_i32_0 = arith.constant 0 : i32
    return %arg1, %arg0, %c0_i32 : i32, i32, i32
  }
  func.func @transform_1(%arg0: i32, %arg1: i32) -> (i32, i32) {
    %c0_i32 = arith.constant 0 : i32
    %c0_i32_0 = arith.constant 0 : i32
    return %arg0, %c0_i32 : i32, i32
  }
  func.func @transform_2(%arg0: i32, %arg1: i32) -> (i32, i32) {
    %c0_i32 = arith.constant 0 : i32
    %c0_i32_0 = arith.constant 0 : i32
    %c0_i32_1 = arith.constant 0 : i32
    return %c0_i32, %c0_i32_0 : i32, i32
  }
  func.func @transform_3(%arg0: i32, %arg1: i32) -> (i32, i32) {
    %c0_i32 = arith.constant 0 : i32
    %c0_i32_0 = arith.constant 0 : i32
    %c0_i32_1 = arith.constant 0 : i32
    return %c0_i32, %c0_i32_0 : i32, i32
  }
  func.func @transform_4(%arg0: i32, %arg1: i32) -> (i32, i32) {
    %c0_i32 = arith.constant 0 : i32
    %c0_i32_0 = arith.constant 0 : i32
    %c0_i32_1 = arith.constant 0 : i32
    return %c0_i32, %c0_i32_0 : i32, i32
  }
  func.func @transform_5(%arg0: i32, %arg1: i32) -> (i32, i32) {
    %c0_i32 = arith.constant 0 : i32
    %c0_i32_0 = arith.constant 0 : i32
    %c0_i32_1 = arith.constant 0 : i32
    return %c0_i32, %c0_i32_0 : i32, i32
  }
  func.func @transform_6(%arg0: i32, %arg1: i32) -> (i32, i32) {
    %c0_i32 = arith.constant 0 : i32
    %c0_i32_0 = arith.constant 0 : i32
    %c0_i32_1 = arith.constant 0 : i32
    return %c0_i32, %c0_i32_0 : i32, i32
  }
  func.func @transform_7(%arg0: i32, %arg1: i32) -> (i32, i32) {
    %c0_i32 = arith.constant 0 : i32
    %c0_i32_0 = arith.constant 0 : i32
    return %arg0, %c0_i32 : i32, i32
  }
}

</mosaic_0001>

<bundles_post_ra>
// kernel: model_forward_pallas.1
= control target key start
LH: loop header
LB: loop body
LE: loop exit
PB: predicated region body
PF: predicated region fallthrough
CT: control target
= control target key end

     0   :  { %vm30_vm0 = vcmask 261120   ;;  %v1527_v2 = vmov 0.0   ;;  %vm1528_vm1 = vmmov 0   ;;  %v197_v22 = vlaneseq  ;;  %s1530_s21 = smov 32   ;;  %s1533_s19 = smov 96   ;;  %s1886_s2 = inlined_call_operand.vmem [shape: f32[32,128], index: 2, kind: input, shape index: {}]   ;;  %s1887_s3 = inlined_call_operand.vmem [shape: f32[32,128], index: 3, kind: input, shape index: {}]   ;;  %s1888_s0 = inlined_call_operand.vmem [shape: f32[8,8,32], index: 0, kind: input, shape index: {}]   ;;  %s1889_s4 = inlined_call_operand.vmem [shape: f32[1,128], index: 4, kind: input, shape index: {}]   ;;  %s1890_s1 = inlined_call_operand.vmem [shape: s32[8,1], index: 1, kind: input, shape index: {}]   ;;  %s1891_s5 = inlined_call_operand.vmem [shape: f32[32,128], index: 5, kind: input, shape index: {}]   ;;  %s1892_s6 = inlined_call_operand.vmem [shape: f32[1,128], index: 6, kind: input, shape index: {}]   ;;  %s1893_s7 = inlined_call_operand.vmem [shape: f32[8,128], index: 7, kind: output, shape index: {}]  }
   0x1   :  { %v45_v0 = vld [vmem:[%s1886_s2 + $0x18] sm:$0xff]  ;;  %v44_v1 = vld [vmem:[%s1886_s2 + $0x10] sm:$0xff]  ;;  %1355 = vmatprep.subr.mxu1 %v1527_v2  ;;  %31 = vst.msk [vmem:[#allocation3] sm:$0xff] %vm30_vm0, %v1527_v2  ;;  %32 = vst.msk [vmem:[#allocation4] sm:$0xff] %vm30_vm0, %v1527_v2  ;;  %1363 = vmatprep.mubr.msk.f32.mxu1 %vm1528_vm1, %v1527_v2  ;;  %v1532_v24 = vmov -1e+30  }
   0x2   :  { %v1584_v3 = vld [vmem:[%s1887_s3 + $0x18] sm:$0xff]  ;;  %1335 = vmatprep.subr.mxu0 %v45_v0  ;;  %v1596_v4 = vld [vmem:[%s1887_s3 + $0x10] sm:$0xff]  ;;  %v43_v5 = vld [vmem:[%s1886_s2 + $0x8] sm:$0xff]  ;;  %v198_v23 = vand.u32 127, %v197_v22  ;;  %33 = vst.msk [vmem:[#allocation5] sm:$0xff] %vm30_vm0, %v1532_v24 }
   0x3   :  { %1356 = vmatpush3.msra.mxu1 %v1584_v3  ;;  %1336 = vmatpush3.msra.mxu0 %v45_v0  ;;  %v34_v6 = vld [vmem:[%s1888_s0] sm:$0xff]  ;;  %v1609_v7 = vld [vmem:[%s1887_s3 + $0x8] sm:$0xff]  ;;  %v36_v54 = vld [vmem:[%s1888_s0 + $0x10] sm:$0xff] }
   0x4   :  { %1357 = vmatprep.subr.mxu1 %v1527_v2  ;;  %1337 = vmatprep.subr.mxu0 %v44_v1  ;;  %v42_v8 = vld [vmem:[%s1886_s2] sm:$0xff]  ;;  %v35_v10 = vld [vmem:[%s1888_s0 + $0x8] sm:$0xff]  ;;  %vm199_vm2 = vcmp.ge.s32.totalorder %v198_v23, 64  ;;  %vm200_vm3 = vcmp.lt.s32.totalorder %v198_v23, 96  ;;  %v37_v55 = vld [vmem:[%s1888_s0 + $0x18] sm:$0xff] }
   0x5   :  { %1358 = vmatpush3.msra.mxu1 %v1596_v4  ;;  %1338 = vmatpush3.msra.mxu0 %v44_v1  ;;  %v1619_v9 = vld [vmem:[%s1887_s3] sm:$0xff]  ;;  %vm1655_vm4 = vmand %vm199_vm2, %vm200_vm3  ;;  %v39_v57 = vld [vmem:[%s1888_s0 + $0x28] sm:$0xff] }
   0x6   :  { %1359 = vmatprep.subr.mxu1 %v1527_v2  ;;  %1339 = vmatprep.subr.mxu0 %v43_v5  ;;  %v1652_v14 = vld [vmem:[%s1889_s4] ss:$0 sm:$0xff]  ;;  %s1529_s4 = smov 64   ;;  %v40_v58 = vld [vmem:[%s1888_s0 + $0x30] sm:$0xff]  ;;  %v41_v59 = vld [vmem:[%s1888_s0 + $0x38] sm:$0xff] }
   0x7   :  { %1343 = vmatprep.mubr.msk.f32.mxu0 %vm30_vm0, %v34_v6  ;;  %1340 = vmatpush3.msra.mxu0 %v43_v5  ;;  %v38_v56 = vld [vmem:[%s1888_s0 + $0x20] sm:$0xff] }
   0x8   :  { %1360 = vmatpush3.msra.mxu1 %v1609_v7  ;;  %1341 = vmatprep.subr.mxu0 %v42_v8  ;;  %v202_v11 = vld [vmem:[#allocation3] sm:$0xff]  ;;  %v203_v28 = vld [vmem:[#allocation4] sm:$0xff] }
   0x9   :  { %1361 = vmatprep.subr.mxu1 %v1527_v2  ;;  %1342 = vmatpush3.msra.mxu0 %v42_v8 }
   0xa   :  { %1362 = vmatpush3.msra.mxu1 %v1619_v9  ;;  %1344 = vmatmul.mubr.msk.f32.vlgmr.msra.gmra.mxu0 %vm30_vm0, %v35_v10 }
   0xb   :  { %1364 = vmatmul.mubr.msk.f32.vlgmr.msra.gmra.mxu1 %vm30_vm0, %v202_v11  ;;  %1366 = vmatprep.subr.mxu1 %v1527_v2 }
   0xc   :  { %1374 = vmatprep.mubr.msk.f32.mxu1 %vm1528_vm1, %v1527_v2  ;;  %1367 = vmatpush3.msra.mxu1 %v1584_v3 }
   0xd   :  { %1377 = vmatprep.subr.mxu0 %v1527_v2  ;;  %1368 = vmatprep.subr.mxu1 %v1527_v2 }
   0xe   :  { %1378 = vmatpush3.msra.mxu0 %v1584_v3  ;;  %1369 = vmatpush3.msra.mxu1 %v1596_v4 }
   0xf   :  { %1379 = vmatprep.subr.mxu0 %v1527_v2  ;;  %1370 = vmatprep.subr.mxu1 %v1527_v2 }
  0x10   :  { %1380 = vmatpush3.msra.mxu0 %v1596_v4  ;;  %1371 = vmatpush3.msra.mxu1 %v1609_v7 }
  0x11   :  { %1381 = vmatprep.subr.mxu0 %v1527_v2  ;;  %1372 = vmatprep.subr.mxu1 %v1527_v2 }
  0x12   :  { %1382 = vmatpush3.msra.mxu0 %v1609_v7  ;;  %1373 = vmatpush3.msra.mxu1 %v1619_v9 }
  0x13   :  { %1383 = vmatprep.subr.mxu0 %v1527_v2  ;;  %1388 = vmatprep.subr.mxu1 %v1527_v2 }
  0x14   :  { %1384 = vmatpush3.msra.mxu0 %v1619_v9  ;;  %1346 = vmatprep.mubr.msk.f32.mxu0 %vm30_vm0, %v36_v54 }
  0x15   :  { %1399 = vmatprep.subr.mxu0 %v1527_v2  ;;  %1347 = vmatmul.mubr.msk.f32.gmra.mxu0 %vm30_vm0, %v37_v55 }
  0x16   :  { %1349 = vmatprep.mubr.msk.f32.mxu0 %vm30_vm0, %v38_v56 }
  0x19   :  { %1350 = vmatmul.mubr.msk.f32.gmra.mxu0 %vm30_vm0, %v39_v57 }
  0x1a   :  { %1352 = vmatprep.mubr.msk.f32.mxu0 %vm30_vm0, %v40_v58 }
  0x1d   :  { %1353 = vmatmul.mubr.msk.f32.gmra.mxu0 %vm30_vm0, %v41_v59 }
  0x1e   :  { %1385 = vmatprep.mubr.msk.f32.mxu0 %vm1528_vm1, %v1527_v2 }
  0xca   :  { %v1345_v12 = vpop.f32.mrf.mxu0 }
  0xcb   :  { %v275_v13 = vpop.f32.mrf.mxu1  ;;  %v150_v39 = vadd.f32 %v1345_v12, %v1652_v14 }
  0xcc   :  { %v144_v15 = vpop.f32.mrf.mxu0 }
  0xcd   :  { %v1365_v16 = vpop.f32.mrf.mxu1  ;;  %v145_v17 = vadd.f32 %v1652_v14, %v144_v15 }
  0xcf   :  { %v279_v18 = vadd.f32 %v275_v13, %v145_v17 }
  0xd1   :  { %v1261_v19 = vmul.f32 -1.442695, %v279_v18 }
  0xd3   :  { %1463 = vpow2.f32 %v1261_v19 }
  0xd4   :  { %1465 = vtanh.f32 %v279_v18 }
  0xd5   :  { %v1348_v0 = vpop.f32.mrf.mxu0 }
  0xd7   :  { %v154_v1 = vpop.f32.mrf.mxu0 }
  0xd8   :  { %v155_v11 = vadd.f32 %v1652_v14, %v154_v1 }
  0xd9   :  { %v1727_v5 = vpop.f32.mrf.mxu0 }
  0xdb   :  { %v1729_v6 = vpop.f32.mrf.mxu0 }
  0xdd   :  { %v1731_v8 = vpop.f32.mrf.mxu0 }
  0xdf   :  { %v1733_v10 = vpop.f32.mrf.mxu0 }
  0xe0   :  { %v1464_v20 = vpop.eup %1463 }
  0xe1   :  { %v284_v21 = vadd.f32 1.0, %v1464_v20  ;;  %v1466_v25 = vpop.eup %1465 }
  0xe3   :  { %1467 = vrcp.f32 %v284_v21 }
  0xf0   :  { %v1468_v26 = vpop.eup %1467 }
  0xf1   :  { %v287_v27 = vsel %vm1655_vm4, %v1466_v25, %v1468_v26 }
  0xf2   :  { %294 = vrot.lane.b32.xlu0 %v287_v27, %s1529_s4 }
  0xf6   :  { %289 = vrot.lane.b32.xlu0 %v203_v28, %s1530_s21 }
 0x164   :  { %v295_v29 = vpop.permute.xlu0 %294 }
 0x165   :  { %v297_v30 = vmul.f32 %v295_v29, %v287_v27 }
 0x167   :  { %299 = vrot.lane.b32.xlu1 %v297_v30, %s1530_s21 }
 0x168   :  { %v290_v31 = vpop.permute.xlu0 %289 }
 0x169   :  { %v292_v32 = vmul.f32 %v290_v31, %v287_v27 }
 0x1d9   :  { %v300_v33 = vpop.permute.xlu1 %299 }
 0x1da   :  { %v302_v34 = vadd.f32 %v300_v33, %v292_v32  ;;  %v160_v32 = vadd.f32 %v1348_v0, %v1652_v14 }
 0x1dc   :  { %1469 = vtanh.f32 %v302_v34 }
 0x1e9   :  { %v1470_v35 = vpop.eup %1469 }
 0x1ea   :  { %305 = vrot.lane.b32.xlu1 %v1470_v35, %s1529_s4 }
 0x25c   :  { %v306_v36 = vpop.permute.xlu1 %305 }
 0x25d   :  { %v1665_v37 = vmul.f32 %v306_v36, %v287_v27 }
 0x25f   :  { %325 = vrot.lane.b32.xlu0 %v1665_v37, %s1530_s21 }
 0x2d1   :  { %v326_v38 = vpop.permute.xlu0 %325 }
 0x2d2   :  { %1375 = vmatmul.mubr.msk.f32.vlgmr.msra.gmra.mxu1 %vm30_vm0, %v326_v38 }
 0x2d3   :  { %1389 = vmatpush3.msra.mxu1 %v1584_v3  ;;  %1396 = vmatprep.mubr.msk.f32.mxu1 %vm1528_vm1, %v1527_v2 }
 0x2d4   :  { %1390 = vmatprep.subr.mxu1 %v1527_v2 }
 0x2d5   :  { %1391 = vmatpush3.msra.mxu1 %v1596_v4 }
 0x2d6   :  { %1392 = vmatprep.subr.mxu1 %v1527_v2 }
 0x2d7   :  { %1393 = vmatpush3.msra.mxu1 %v1609_v7 }
 0x2d8   :  { %1394 = vmatprep.subr.mxu1 %v1527_v2 }
 0x2d9   :  { %1395 = vmatpush3.msra.mxu1 %v1619_v9 }
 0x2da   :  { %1410 = vmatprep.subr.mxu1 %v1527_v2 }
 0x392   :  { %v395_v40 = vpop.f32.mrf.mxu1 }
 0x393   :  { %v399_v41 = vadd.f32 %v395_v40, %v150_v39 }
 0x394   :  { %v1376_v42 = vpop.f32.mrf.mxu1 }
 0x395   :  { %v1263_v43 = vmul.f32 -1.442695, %v399_v41 }
 0x397   :  { %1471 = vpow2.f32 %v1263_v43 }
 0x398   :  { %1473 = vtanh.f32 %v399_v41 }
 0x3a4   :  { %v1472_v44 = vpop.eup %1471 }
 0x3a5   :  { %v404_v45 = vadd.f32 1.0, %v1472_v44  ;;  %v1474_v46 = vpop.eup %1473 }
 0x3a7   :  { %1475 = vrcp.f32 %v404_v45 }
 0x3b4   :  { %v1476_v47 = vpop.eup %1475 }
 0x3b5   :  { %v407_v48 = vsel %vm1655_vm4, %v1474_v46, %v1476_v47 }
 0x3b6   :  { %410 = vrot.lane.b32.xlu1 %v407_v48, %s1529_s4  ;;  %v408_v51 = vmul.f32 %v407_v48, %v302_v34 }
 0x428   :  { %v411_v49 = vpop.permute.xlu1 %410 }
 0x429   :  { %v413_v50 = vmul.f32 %v411_v49, %v407_v48 }
 0x42b   :  { %415 = vrot.lane.b32.xlu0 %v413_v50, %s1530_s21 }
 0x49d   :  { %v416_v52 = vpop.permute.xlu0 %415 }
 0x49e   :  { %v418_v53 = vadd.f32 %v416_v52, %v408_v51  ;;  %v165_v52 = vadd.f32 %v1652_v14, %v1729_v6 }
 0x4a0   :  { %1477 = vtanh.f32 %v418_v53 }
 0x4ad   :  { %v1478_v60 = vpop.eup %1477 }
 0x4ae   :  { %421 = vrot.lane.b32.xlu1 %v1478_v60, %s1529_s4 }
 0x520   :  { %v422_v61 = vpop.permute.xlu1 %421 }
 0x521   :  { %v1712_v62 = vmul.f32 %v422_v61, %v407_v48 }
 0x523   :  { %442 = vrot.lane.b32.xlu0 %v1712_v62, %s1530_s21 }
 0x595   :  { %v443_v63 = vpop.permute.xlu0 %442 }
 0x596   :  { %1386 = vmatmul.mubr.msk.f32.vlgmr.msra.gmra.mxu0 %vm30_vm0, %v443_v63 }
 0x597   :  { %1400 = vmatpush3.msra.mxu0 %v1584_v3  ;;  %1407 = vmatprep.mubr.msk.f32.mxu0 %vm1528_vm1, %v1527_v2 }
 0x598   :  { %1401 = vmatprep.subr.mxu0 %v1527_v2 }
 0x599   :  { %1402 = vmatpush3.msra.mxu0 %v1596_v4 }
 0x59a   :  { %1403 = vmatprep.subr.mxu0 %v1527_v2 }
 0x59b   :  { %1404 = vmatpush3.msra.mxu0 %v1609_v7 }
 0x59c   :  { %1405 = vmatprep.subr.mxu0 %v1527_v2 }
 0x59d   :  { %1406 = vmatpush3.msra.mxu0 %v1619_v9 }
 0x59e   :  { %1421 = vmatprep.subr.mxu0 %v1527_v2 }
 0x656   :  { %v512_v12 = vpop.f32.mrf.mxu0 }
 0x657   :  { %v516_v13 = vadd.f32 %v512_v12, %v155_v11 }
 0x658   :  { %v1387_v15 = vpop.f32.mrf.mxu0 }
 0x659   :  { %v1265_v16 = vmul.f32 -1.442695, %v516_v13 }
 0x65b   :  { %1479 = vpow2.f32 %v1265_v16 }
 0x65c   :  { %1481 = vtanh.f32 %v516_v13 }
 0x668   :  { %v1480_v17 = vpop.eup %1479 }
 0x669   :  { %v521_v18 = vadd.f32 1.0, %v1480_v17  ;;  %v1482_v19 = vpop.eup %1481  ;;  %v170_v17 = vadd.f32 %v1727_v5, %v1652_v14 }
 0x66b   :  { %1483 = vrcp.f32 %v521_v18 }
 0x678   :  { %v1484_v20 = vpop.eup %1483 }
 0x679   :  { %v524_v21 = vsel %vm1655_vm4, %v1482_v19, %v1484_v20 }
 0x67a   :  { %527 = vrot.lane.b32.xlu1 %v524_v21, %s1529_s4  ;;  %v525_v25 = vmul.f32 %v524_v21, %v418_v53 }
 0x6ec   :  { %v528_v22 = vpop.permute.xlu1 %527 }
 0x6ed   :  { %v530_v23 = vmul.f32 %v528_v22, %v524_v21 }
 0x6ef   :  { %532 = vrot.lane.b32.xlu0 %v530_v23, %s1530_s21 }
 0x761   :  { %v533_v26 = vpop.permute.xlu0 %532 }
 0x762   :  { %v535_v27 = vadd.f32 %v533_v26, %v525_v25 }
 0x764   :  { %1485 = vtanh.f32 %v535_v27 }
 0x771   :  { %v1486_v28 = vpop.eup %1485 }
 0x772   :  { %538 = vrot.lane.b32.xlu1 %v1486_v28, %s1529_s4 }
 0x7e4   :  { %v539_v29 = vpop.permute.xlu1 %538 }
 0x7e5   :  { %v1741_v30 = vmul.f32 %v539_v29, %v524_v21 }
 0x7e7   :  { %559 = vrot.lane.b32.xlu0 %v1741_v30, %s1530_s21 }
 0x859   :  { %v560_v31 = vpop.permute.xlu0 %559 }
 0x85a   :  { %1397 = vmatmul.mubr.msk.f32.vlgmr.msra.gmra.mxu1 %vm30_vm0, %v560_v31 }
 0x85b   :  { %1411 = vmatpush3.msra.mxu1 %v1584_v3  ;;  %1418 = vmatprep.mubr.msk.f32.mxu1 %vm1528_vm1, %v1527_v2 }
 0x85c   :  { %1412 = vmatprep.subr.mxu1 %v1527_v2 }
 0x85d   :  { %1413 = vmatpush3.msra.mxu1 %v1596_v4 }
 0x85e   :  { %1414 = vmatprep.subr.mxu1 %v1527_v2 }
 0x85f   :  { %1415 = vmatpush3.msra.mxu1 %v1609_v7 }
 0x860   :  { %1416 = vmatprep.subr.mxu1 %v1527_v2 }
 0x861   :  { %1417 = vmatpush3.msra.mxu1 %v1619_v9 }
 0x862   :  { %1432 = vmatprep.subr.mxu1 %v1527_v2 }
 0x91a   :  { %v629_v33 = vpop.f32.mrf.mxu1 }
 0x91b   :  { %v633_v34 = vadd.f32 %v629_v33, %v160_v32  ;;  %v175_v33 = vadd.f32 %v1652_v14, %v1733_v10 }
 0x91c   :  { %v1398_v35 = vpop.f32.mrf.mxu1 }
 0x91d   :  { %v1267_v36 = vmul.f32 -1.442695, %v633_v34 }
 0x91f   :  { %1487 = vpow2.f32 %v1267_v36 }
 0x920   :  { %1489 = vtanh.f32 %v633_v34 }
 0x92c   :  { %v1488_v38 = vpop.eup %1487 }
 0x92d   :  { %v638_v39 = vadd.f32 1.0, %v1488_v38  ;;  %v1490_v40 = vpop.eup %1489 }
 0x92f   :  { %1491 = vrcp.f32 %v638_v39 }
 0x93c   :  { %v1492_v41 = vpop.eup %1491 }
 0x93d   :  { %v641_v42 = vsel %vm1655_vm4, %v1490_v40, %v1492_v41 }
 0x93e   :  { %644 = vrot.lane.b32.xlu1 %v641_v42, %s1529_s4  ;;  %v642_v45 = vmul.f32 %v641_v42, %v535_v27 }
 0x9b0   :  { %v645_v43 = vpop.permute.xlu1 %644 }
 0x9b1   :  { %v647_v44 = vmul.f32 %v645_v43, %v641_v42 }
 0x9b3   :  { %649 = vrot.lane.b32.xlu0 %v647_v44, %s1530_s21 }
 0xa25   :  { %v650_v46 = vpop.permute.xlu0 %649 }
 0xa26   :  { %v652_v47 = vadd.f32 %v650_v46, %v642_v45 }
 0xa28   :  { %1493 = vtanh.f32 %v652_v47 }
 0xa35   :  { %v1494_v48 = vpop.eup %1493 }
 0xa36   :  { %655 = vrot.lane.b32.xlu1 %v1494_v48, %s1529_s4 }
 0xaa8   :  { %v656_v49 = vpop.permute.xlu1 %655 }
 0xaa9   :  { %v1762_v50 = vmul.f32 %v656_v49, %v641_v42 }
 0xaab   :  { %676 = vrot.lane.b32.xlu0 %v1762_v50, %s1530_s21 }
 0xb1d   :  { %v677_v51 = vpop.permute.xlu0 %676 }
 0xb1e   :  { %1408 = vmatmul.mubr.msk.f32.vlgmr.msra.gmra.mxu0 %vm30_vm0, %v677_v51 }
 0xb1f   :  { %1422 = vmatpush3.msra.mxu0 %v1584_v3  ;;  %1429 = vmatprep.mubr.msk.f32.mxu0 %vm1528_vm1, %v1527_v2 }
 0xb20   :  { %1423 = vmatprep.subr.mxu0 %v1527_v2 }
 0xb21   :  { %1424 = vmatpush3.msra.mxu0 %v1596_v4 }
 0xb22   :  { %1425 = vmatprep.subr.mxu0 %v1527_v2 }
 0xb23   :  { %1426 = vmatpush3.msra.mxu0 %v1609_v7 }
 0xb24   :  { %1427 = vmatprep.subr.mxu0 %v1527_v2 }
 0xb25   :  { %1428 = vmatpush3.msra.mxu0 %v1619_v9 }
 0xb26   :  { %1443 = vmatprep.subr.mxu0 %v1527_v2 }
 0xbde   :  { %v746_v53 = vpop.f32.mrf.mxu0 }
 0xbdf   :  { %v750_v54 = vadd.f32 %v746_v53, %v165_v52  ;;  %v1531_v53 = vmov 0  }
 0xbe0   :  { %v1409_v55 = vpop.f32.mrf.mxu0  ;;  %1461 = vset.pattern.permute.xlu1 %v1531_v53  ;;  %1462 = vset.pattern.permute.xlu0 %v1531_v53 }
 0xbe1   :  { %v1269_v56 = vmul.f32 -1.442695, %v750_v54 }
 0xbe3   :  { %1495 = vpow2.f32 %v1269_v56 }
 0xbe4   :  { %1497 = vtanh.f32 %v750_v54  ;;  %v180_v54 = vadd.f32 %v1731_v8, %v1652_v14 }
 0xbf0   :  { %v1496_v57 = vpop.eup %1495 }
 0xbf1   :  { %v755_v58 = vadd.f32 1.0, %v1496_v57  ;;  %v1498_v59 = vpop.eup %1497 }
 0xbf3   :  { %1499 = vrcp.f32 %v755_v58 }
 0xc00   :  { %v1500_v60 = vpop.eup %1499 }
 0xc01   :  { %v758_v61 = vsel %vm1655_vm4, %v1498_v59, %v1500_v60 }
 0xc02   :  { %761 = vrot.lane.b32.xlu1 %v758_v61, %s1529_s4  ;;  %v759_v1 = vmul.f32 %v758_v61, %v652_v47 }
 0xc74   :  { %v762_v63 = vpop.permute.xlu1 %761 }
 0xc75   :  { %v764_v0 = vmul.f32 %v762_v63, %v758_v61 }
 0xc77   :  { %766 = vrot.lane.b32.xlu0 %v764_v0, %s1530_s21 }
 0xce9   :  { %v767_v6 = vpop.permute.xlu0 %766 }
 0xcea   :  { %v769_v11 = vadd.f32 %v767_v6, %v759_v1 }
 0xcec   :  { %1501 = vtanh.f32 %v769_v11 }
 0xcf9   :  { %v1502_v12 = vpop.eup %1501 }
 0xcfa   :  { %772 = vrot.lane.b32.xlu1 %v1502_v12, %s1529_s4 }
 0xd6c   :  { %v773_v13 = vpop.permute.xlu1 %772 }
 0xd6d   :  { %v1784_v15 = vmul.f32 %v773_v13, %v758_v61  ;;  %v195_v61 = vld [vmem:[%s1890_s1] sm:$0xff] }
 0xd6e   :  { %vm310_vm5 = vcmp.gt.s32.totalorder %v195_v61, 0  ;;  %vm544_vm6 = vcmp.gt.s32.totalorder %v195_v61, 2  ;;  %vm661_vm7 = vcmp.gt.s32.totalorder %v195_v61, 3  ;;  %vm895_vm8 = vcmp.gt.s32.totalorder %v195_v61, 5 }
 0xd6f   :  { %793 = vrot.lane.b32.xlu0 %v1784_v15, %s1530_s21  ;;  %v311_v14 = vsel %vm310_vm5, 1, %v1531_v53  ;;  %v545_v8 = vsel %vm544_vm6, 1, %v1531_v53  ;;  %v662_v6 = vsel %vm661_vm7, 1, %v1531_v53  ;;  %vm1129_vm9 = vcmp.gt.s32.totalorder %v195_v61, 7 }
 0xd70   :  { %v1130_v12 = vsel %vm1129_vm9, 1, %v1531_v53  ;;  %vm427_vm10 = vcmp.gt.s32.totalorder %v195_v61, 1  ;;  %vm778_vm11 = vcmp.gt.s32.totalorder %v195_v61, 4  ;;  %vm1012_vm12 = vcmp.gt.s32.totalorder %v195_v61, 6 }
 0xde1   :  { %v794_v16 = vpop.permute.xlu0 %793 }
 0xde2   :  { %1419 = vmatmul.mubr.msk.f32.vlgmr.msra.gmra.mxu1 %vm30_vm0, %v794_v16 }
 0xde3   :  { %1433 = vmatpush3.msra.mxu1 %v1584_v3  ;;  %1440 = vmatprep.mubr.msk.f32.mxu1 %vm1528_vm1, %v1527_v2 }
 0xde4   :  { %1434 = vmatprep.subr.mxu1 %v1527_v2 }
 0xde5   :  { %1435 = vmatpush3.msra.mxu1 %v1596_v4 }
 0xde6   :  { %1436 = vmatprep.subr.mxu1 %v1527_v2 }
 0xde7   :  { %1437 = vmatpush3.msra.mxu1 %v1609_v7 }
 0xde8   :  { %1438 = vmatprep.subr.mxu1 %v1527_v2 }
 0xde9   :  { %1439 = vmatpush3.msra.mxu1 %v1619_v9 }
 0xea2   :  { %v863_v18 = vpop.f32.mrf.mxu1 }
 0xea3   :  { %v867_v3 = vadd.f32 %v863_v18, %v170_v17  ;;  %v428_v17 = vsel %vm427_vm10, 1, %v1531_v53  ;;  %v779_v18 = vsel %vm778_vm11, 1, %v1531_v53 }
 0xea4   :  { %v1420_v19 = vpop.f32.mrf.mxu1 }
 0xea5   :  { %v1271_v20 = vmul.f32 -1.442695, %v867_v3 }
 0xea7   :  { %1503 = vpow2.f32 %v1271_v20 }
 0xea8   :  { %1505 = vtanh.f32 %v867_v3  ;;  %v1013_v3 = vsel %vm1012_vm12, 1, %v1531_v53 }
 0xeb4   :  { %v1504_v21 = vpop.eup %1503 }
 0xeb5   :  { %v872_v22 = vadd.f32 1.0, %v1504_v21  ;;  %v1506_v4 = vpop.eup %1505 }
 0xeb7   :  { %1507 = vrcp.f32 %v872_v22 }
 0xec4   :  { %v1508_v23 = vpop.eup %1507 }
 0xec5   :  { %v875_v7 = vsel %vm1655_vm4, %v1506_v4, %v1508_v23 }
 0xec6   :  { %878 = vrot.lane.b32.xlu1 %v875_v7, %s1529_s4  ;;  %v876_v5 = vmul.f32 %v875_v7, %v769_v11  ;;  %v896_v11 = vsel %vm895_vm8, 1, %v1531_v53 }
 0xf38   :  { %v879_v9 = vpop.permute.xlu1 %878 }
 0xf39   :  { %v881_v25 = vmul.f32 %v879_v9, %v875_v7 }
 0xf3b   :  { %883 = vrot.lane.b32.xlu0 %v881_v25, %s1530_s21 }
 0xfad   :  { %v884_v26 = vpop.permute.xlu0 %883 }
 0xfae   :  { %v886_v27 = vadd.f32 %v884_v26, %v876_v5 }
 0xfb0   :  { %1509 = vtanh.f32 %v886_v27 }
 0xfbd   :  { %v1510_v28 = vpop.eup %1509 }
 0xfbe   :  { %889 = vrot.lane.b32.xlu1 %v1510_v28, %s1529_s4  ;;  %v1164_v28 = vld [vmem:[%s1891_s5 + $0x10] sm:$0xff] }
0x1030   :  { %v890_v29 = vpop.permute.xlu1 %889 }
0x1031   :  { %v1805_v31 = vmul.f32 %v890_v29, %v875_v7 }
0x1033   :  { %910 = vrot.lane.b32.xlu0 %v1805_v31, %s1530_s21 }
0x10a5   :  { %v911_v32 = vpop.permute.xlu0 %910 }
0x10a6   :  { %1430 = vmatmul.mubr.msk.f32.vlgmr.msra.gmra.mxu0 %vm30_vm0, %v911_v32 }
0x10a7   :  { %1451 = vmatprep.mubr.msk.f32.mxu0 %vm1528_vm1, %v1527_v2 }
0x1166   :  { %v980_v34 = vpop.f32.mrf.mxu0 }
0x1167   :  { %v984_v35 = vadd.f32 %v980_v34, %v175_v33  ;;  %v1162_v34 = vld [vmem:[%s1891_s5] sm:$0xff] }
0x1168   :  { %v1431_v36 = vpop.f32.mrf.mxu0 }
0x1169   :  { %v1273_v38 = vmul.f32 -1.442695, %v984_v35 }
0x116b   :  { %1511 = vpow2.f32 %v1273_v38 }
0x116c   :  { %1513 = vtanh.f32 %v984_v35 }
0x1178   :  { %v1512_v39 = vpop.eup %1511 }
0x1179   :  { %v989_v40 = vadd.f32 1.0, %v1512_v39  ;;  %v1514_v41 = vpop.eup %1513  ;;  %v204_v39 = vld [vmem:[#allocation5] sm:$0xff] }
0x117b   :  { %1515 = vrcp.f32 %v989_v40 }
0x1188   :  { %v1516_v42 = vpop.eup %1515 }
0x1189   :  { %v992_v43 = vsel %vm1655_vm4, %v1514_v41, %v1516_v42 }
0x118a   :  { %995 = vrot.lane.b32.xlu1 %v992_v43, %s1529_s4  ;;  %v993_v10 = vmul.f32 %v992_v43, %v886_v27  ;;  %v1165_v27 = vld [vmem:[%s1891_s5 + $0x18] sm:$0xff] }
0x118b   :  { %1444 = vmatpush3.msra.mxu0 %v1165_v27 }
0x118c   :  { %1445 = vmatprep.subr.mxu0 %v1527_v2 }
0x118d   :  { %1446 = vmatpush3.msra.mxu0 %v1164_v28 }
0x118e   :  { %1447 = vmatprep.subr.mxu0 %v1527_v2 }
0x11fc   :  { %v996_v44 = vpop.permute.xlu1 %995 }
0x11fd   :  { %v998_v45 = vmul.f32 %v996_v44, %v992_v43 }
0x11ff   :  { %1000 = vrot.lane.b32.xlu0 %v998_v45, %s1530_s21 }
0x1271   :  { %v1001_v46 = vpop.permute.xlu0 %1000 }
0x1272   :  { %v1818_v47 = vadd.f32 %v1001_v46, %v993_v10 }
0x1274   :  { %1517 = vtanh.f32 %v1818_v47 }
0x1281   :  { %v1518_v48 = vpop.eup %1517 }
0x1282   :  { %1006 = vrot.lane.b32.xlu1 %v1518_v48, %s1529_s4 }
0x12f4   :  { %v1007_v49 = vpop.permute.xlu1 %1006 }
0x12f5   :  { %v1822_v51 = vmul.f32 %v1007_v49, %v992_v43 }
0x12f7   :  { %1027 = vrot.lane.b32.xlu0 %v1822_v51, %s1530_s21 }
0x1369   :  { %v1028_v52 = vpop.permute.xlu0 %1027 }
0x136a   :  { %1441 = vmatmul.mubr.msk.f32.vlgmr.msra.gmra.mxu1 %vm30_vm0, %v1028_v52 }
0x142a   :  { %v1097_v55 = vpop.f32.mrf.mxu1 }
0x142b   :  { %v1101_v56 = vadd.f32 %v1097_v55, %v180_v54 }
0x142c   :  { %v1442_v57 = vpop.f32.mrf.mxu1 }
0x142d   :  { %v1275_v58 = vmul.f32 -1.442695, %v1101_v56 }
0x142f   :  { %1519 = vpow2.f32 %v1275_v58 }
0x1430   :  { %1521 = vtanh.f32 %v1101_v56 }
0x143c   :  { %v1520_v59 = vpop.eup %1519 }
0x143d   :  { %v1106_v60 = vadd.f32 1.0, %v1520_v59  ;;  %v1522_v63 = vpop.eup %1521  ;;  %v1276_v59 = vld [vmem:[%s1892_s6] ss:$0 sm:$0xff] }
0x143f   :  { %1523 = vrcp.f32 %v1106_v60 }
0x144c   :  { %v1524_v0 = vpop.eup %1523 }
0x144d   :  { %v1834_v1 = vsel %vm1655_vm4, %v1522_v63, %v1524_v0 }
0x144e   :  { %1112 = vrot.lane.b32.xlu1 %v1834_v1, %s1529_s4  ;;  %v1110_v4 = vmul.f32 %v1834_v1, %v1818_v47 }
0x1452   :  { %313 = vperm.xlu1 %1461, %v311_v14  }
0x1456   :  { %547 = vperm.xlu1 %1461, %v545_v8  }
0x145a   :  { %664 = vperm.xlu1 %1461, %v662_v6  }
0x145e   :  { %898 = vperm.xlu1 %1461, %v896_v11  }
0x1462   :  { %1132 = vperm.xlu1 %1461, %v1130_v12  }
0x14c0   :  { %v1113_v13 = vpop.permute.xlu1 %1112 }
0x14c1   :  { %v1115_v16 = vmul.f32 %v1113_v13, %v1834_v1 }
0x14c3   :  { %1117 = vrot.lane.b32.xlu0 %v1115_v16, %s1530_s21 }
0x14c7   :  { %430 = vperm.xlu0 %1462, %v428_v17  }
0x14cb   :  { %781 = vperm.xlu0 %1462, %v779_v18  }
0x14cd   :  { %v314_v19 = vpop.permute.xlu1 %313 }
0x14ce   :  { %vm315_vm13 = vcmp.eq.s32.totalorder %v314_v19, 1 }
0x14cf   :  { %v316_v20 = vsel %vm315_vm13, %v1665_v37, -1e+30  ;;  %1015 = vperm.xlu0 %1462, %v1013_v3  }
0x14d0   :  { %318 = vrot.lane.b32.xlu1 %v316_v20, %s1530_s21 }
0x14d1   :  { %v548_v21 = vpop.permute.xlu1 %547 }
0x14d2   :  { %vm549_vm14 = vcmp.eq.s32.totalorder %v548_v21, 1 }
0x14d3   :  { %v550_v22 = vsel %vm549_vm14, %v1741_v30, -1e+30 }
0x14d4   :  { %552 = vrot.lane.b32.xlu1 %v550_v22, %s1530_s21 }
0x14d5   :  { %v665_v5 = vpop.permute.xlu1 %664 }
0x14d6   :  { %vm666_vm2 = vcmp.eq.s32.totalorder %v665_v5, 1 }
0x14d9   :  { %v899_v29 = vpop.permute.xlu1 %898 }
0x14da   :  { %vm900_vm3 = vcmp.eq.s32.totalorder %v899_v29, 1 }
0x14db   :  { %v901_v32 = vsel %vm900_vm3, %v1805_v31, -1e+30 }
0x14dd   :  { %v1133_v35 = vpop.permute.xlu1 %1132 }
0x14de   :  { %vm1134_vm5 = vcmp.eq.s32.totalorder %v1133_v35, 1 }
0x1535   :  { %v1118_v23 = vpop.permute.xlu0 %1117 }
0x1536   :  { %v1120_v7 = vadd.f32 %v1118_v23, %v1110_v4 }
0x1538   :  { %1525 = vtanh.f32 %v1120_v7 }
0x1542   :  { %v431_v9 = vpop.permute.xlu0 %430  ;;  %v319_v40 = vpop.permute.xlu1 %318 }
0x1543   :  { %vm432_vm15 = vcmp.eq.s32.totalorder %v431_v9, 1  ;;  %v321_v41 = vmax.f32 %v204_v39, %v319_v40 }
0x1544   :  { %v433_v30 = vsel %vm432_vm15, %v1712_v62, -1e+30 }
0x1545   :  { %v1526_v25 = vpop.eup %1525 }
0x1546   :  { %v782_v37 = vpop.permute.xlu0 %781  ;;  %1123 = vrot.lane.b32.xlu0 %v1526_v25, %s1529_s4  ;;  %v553_v44 = vpop.permute.xlu1 %552 }
0x1547   :  { %vm783_vm1 = vcmp.eq.s32.totalorder %v782_v37, 1 }
0x1548   :  { %v784_v26 = vsel %vm783_vm1, %v1784_v15, -1e+30  ;;  %v667_v15 = vsel %vm666_vm2, %v1762_v50, -1e+30  ;;  %v1163_v50 = vld [vmem:[%s1891_s5 + $0x8] sm:$0xff] }
0x1549   :  { %786 = vrot.lane.b32.xlu1 %v784_v26, %s1530_s21  ;;  %1448 = vmatpush3.msra.mxu0 %v1163_v50 }
0x154a   :  { %435 = vrot.lane.b32.xlu0 %v433_v30, %s1530_s21  ;;  %v1016_v62 = vpop.permute.xlu0 %1015  ;;  %1449 = vmatprep.subr.mxu0 %v1527_v2 }
0x154b   :  { %vm1017_vm4 = vcmp.eq.s32.totalorder %v1016_v62, 1  ;;  %1450 = vmatpush3.msra.mxu0 %v1162_v34 }
0x154c   :  { %v1018_v33 = vsel %vm1017_vm4, %v1822_v51, -1e+30 }
0x154d   :  { %1158 = vperm.xlu1 %1461, %v311_v14  }
0x154e   :  { %669 = vrot.lane.b32.xlu0 %v667_v15, %s1530_s21 }
0x1552   :  { %903 = vrot.lane.b32.xlu0 %v901_v32, %s1530_s21 }
0x1556   :  { %1020 = vrot.lane.b32.xlu0 %v1018_v33, %s1530_s21 }
0x15b8   :  { %v1124_v31 = vpop.permute.xlu0 %1123 }
0x15b9   :  { %v1126_v36 = vmul.f32 %v1124_v31, %v1834_v1 }
0x15bb   :  { %1142 = vrot.lane.b32.xlu0 %v1126_v36, %s1530_s21  ;;  %v1135_v38 = vsel %vm1134_vm5, %v1126_v36, -1e+30  ;;  %v787_v47 = vpop.permute.xlu1 %786 }
0x15bc   :  { %1137 = vrot.lane.b32.xlu1 %v1135_v38, %s1530_s21  ;;  %v436_v2 = vpop.permute.xlu0 %435 }
0x15bd   :  { %v438_v42 = vmax.f32 %v321_v41, %v436_v2 }
0x15bf   :  { %v555_v45 = vmax.f32 %v438_v42, %v553_v44 }
0x15c0   :  { %1147 = vrot.lane.b32.xlu1 %v1120_v7, %s1533_s19  ;;  %v670_v43 = vpop.permute.xlu0 %669 }
0x15c1   :  { %v672_v10 = vmax.f32 %v555_v45, %v670_v43 }
0x15c3   :  { %v789_v48 = vmax.f32 %v672_v10, %v787_v47 }
0x15c4   :  { %v904_v46 = vpop.permute.xlu0 %903 }
0x15c5   :  { %v906_v52 = vmax.f32 %v789_v48, %v904_v46 }
0x15c8   :  { %v1021_v49 = vpop.permute.xlu0 %1020  ;;  %v1159_v51 = vpop.permute.xlu1 %1158 }
0x15c9   :  { %v1023_v53 = vmax.f32 %v906_v52, %v1021_v49  ;;  %vm1160_vm6 = vcmp.eq.s32.totalorder %v1159_v51, 1 }
0x162d   :  { %v1143_v54 = vpop.permute.xlu0 %1142 }
0x162e   :  { %1145 = vst.msk [vmem:[#allocation3] sm:$0xff] %vm30_vm0, %v1143_v54  ;;  %v1138_v55 = vpop.permute.xlu1 %1137 }
0x162f   :  { %v1140_v56 = vmax.f32 %v1023_v53, %v1138_v55 }
0x1631   :  { %1151 = vst.msk [vmem:[#allocation5] sm:$0xff] %vm30_vm0, %v1140_v56  ;;  %v1161_v57 = vsel %vm1160_vm6, %v1140_v56, 0.0 }
0x1632   :  { %v1148_v58 = vpop.permute.xlu1 %1147  ;;  %1452 = vmatmul.mubr.msk.f32.vlgmr.msra.gmra.mxu0 %vm30_vm0, %v1161_v57 }
0x1633   :  { %1150 = vst.msk [vmem:[#allocation4] sm:$0xff] %vm30_vm0, %v1148_v58 }
0x16f2   :  { %v1242_v60 = vpop.f32.mrf.mxu0 }
0x16f3   :  { %v1243_v61 = vadd.f32 %v1276_v59, %v1242_v60 }
0x16f4   :  { %v1453_v63 = vpop.f32.mrf.mxu0 }
0x16f5   :  { %1246 = vst [vmem:[%s1893_s7] sm:$0xff] %v1243_v61 }

</bundles_post_ra>
